<compile_context>
chip_gen: v5e
topology: v5e:2x2
jax: 0.10.0
libtpu: 0.0.40
codegen_flags: <defaults>
</compile_context>

<pallas_src>
import functools
import math

import jax
import jax.numpy as jnp
from jax import lax
from jax.experimental import pallas as pl
from jax.experimental.pallas import tpu as pltpu


# VMEM budgeting: sized for v7x (64 MiB physical, 32 MiB scoped default) with
# headroom; also raises the 16/32 MiB scoped defaults on v5e/v6e.
_VMEM_LIMIT = 48 * 1024 * 1024            # explicit limit handed to Mosaic
_RESIDENT_WEIGHT_BUDGET = 40 * 1024 * 1024  # cap for the resident-weight path


# ------------------------------ tiling helpers -------------------------------

def _sublane_multiple(dtype):
    """Second-minor block multiple for a dtype (8 f32, 16 bf16, 32 int8/fp8)."""
    return max(8, 32 // jnp.dtype(dtype).itemsize)


def _choose_tile(dim, max_tile, multiple, min_blocks=1):
    """Largest tile <= max_tile that divides `dim`, is a multiple of `multiple`,
    and (when possible) yields at least `min_blocks` grid steps.  Falls back to
    the full dim (always a legal block shape)."""
    cap = min(max_tile, dim)
    if min_blocks > 1 and dim >= multiple * min_blocks:
        cap = min(cap, dim // min_blocks)
    t = (cap // multiple) * multiple
    while t >= multiple:
        if dim % t == 0:
            return t
        t -= multiple
    return dim


# ------------------- fused projection (resident weights) ---------------------

def _fused_linear_kernel(x_ref, *refs, n_out):
    """One x tile against n_out resident weights -> n_out output tiles."""
    w_refs = refs[:n_out]
    o_refs = refs[n_out:]
    x = x_ref[...]
    for w_ref, o_ref in zip(w_refs, o_refs):
        o_ref[...] = jnp.dot(
            x, w_ref[...], preferred_element_type=jnp.float32
        ).astype(o_ref.dtype)


def _matmul_kernel(x_ref, w_ref, o_ref, acc_ref):
    # Fallback streaming matmul: y = x @ W_t with a K reduction grid axis.
    @pl.when(pl.program_id(2) == 0)
    def _():
        acc_ref[...] = jnp.zeros_like(acc_ref)

    acc_ref[...] += jnp.dot(
        x_ref[...], w_ref[...], preferred_element_type=jnp.float32
    )

    @pl.when(pl.program_id(2) == pl.num_programs(2) - 1)
    def _():
        o_ref[...] = acc_ref[...].astype(o_ref.dtype)


def _linear_tiled(x2d, w_t, *, tm_max=512, tn_max=512, tk_max=512):
    """Fallback: (M,O,K)-tiled matmul with f32 accumulator (weights too big to
    keep resident)."""
    M, K = x2d.shape
    K2, O = w_t.shape
    assert K == K2
    mult = _sublane_multiple(x2d.dtype)
    tm = _choose_tile(M, tm_max, mult, min_blocks=2)
    tn = _choose_tile(O, tn_max, 128)
    tk = _choose_tile(K, tk_max, 128)
    grid = (M // tm, O // tn, K // tk)
    cost = pl.CostEstimate(
        flops=2 * M * O * K,
        transcendentals=0,
        bytes_accessed=(M * K + K * O + M * O) * x2d.dtype.itemsize,
    )
    return pl.pallas_call(
        _matmul_kernel,
        out_shape=jax.ShapeDtypeStruct((M, O), x2d.dtype),
        grid=grid,
        in_specs=[
            pl.BlockSpec((tm, tk), lambda i, j, k: (i, k)),
            pl.BlockSpec((tk, tn), lambda i, j, k: (k, j)),
        ],
        out_specs=pl.BlockSpec((tm, tn), lambda i, j, k: (i, j)),
        scratch_shapes=[pltpu.VMEM((tm, tn), jnp.float32)],
        compiler_params=pltpu.CompilerParams(
            dimension_semantics=("parallel", "parallel", "arbitrary"),
            vmem_limit_bytes=_VMEM_LIMIT,
        ),
        cost_estimate=cost,
    )(x2d, w_t)


def _fused_linear(x2d, weights_t, *, tm_max=512):
    """y_i = x2d @ weights_t[i] for pre-transposed weights (K, O_i).

    Single pallas_call: x streamed in (tm, K) tiles (read from HBM once for all
    outputs); each weight is a single resident VMEM block (constant index_map ->
    DMA'd only on the first grid step).  Falls back to the streaming matmul per
    weight when the resident working set would exceed the v7x VMEM budget.
    """
    M, K = x2d.shape
    n_out = len(weights_t)
    widths = [int(w.shape[1]) for w in weights_t]
    for w in weights_t:
        assert w.shape[0] == K
    itemsize = x2d.dtype.itemsize
    mult = _sublane_multiple(x2d.dtype)
    tm = _choose_tile(M, tm_max, mult, min_blocks=2)

    # Double-buffered x/out tiles + (double-buffered) resident weight blocks.
    resident_bytes = 2 * itemsize * (K * sum(widths) + tm * (K + sum(widths)))
    if resident_bytes > _RESIDENT_WEIGHT_BUDGET:
        # TODO(synk): large-E path re-reads x once per weight; add a K-reduction
        # axis to the fused kernel if this ever becomes the common case.
        return tuple(_linear_tiled(x2d, w) for w in weights_t)

    kernel = functools.partial(_fused_linear_kernel, n_out=n_out)
    in_specs = [pl.BlockSpec((tm, K), lambda i: (i, 0))]
    in_specs += [pl.BlockSpec((K, O), lambda i: (0, 0)) for O in widths]
    out_specs = [pl.BlockSpec((tm, O), lambda i: (i, 0)) for O in widths]
    out_shape = [jax.ShapeDtypeStruct((M, O), x2d.dtype) for O in widths]
    cost = pl.CostEstimate(
        flops=2 * M * K * sum(widths),
        transcendentals=0,
        bytes_accessed=(M * K + K * sum(widths) + M * sum(widths)) * itemsize,
    )
    outs = pl.pallas_call(
        kernel,
        out_shape=out_shape,
        grid=(M // tm,),
        in_specs=in_specs,
        out_specs=out_specs,
        compiler_params=pltpu.CompilerParams(
            dimension_semantics=("parallel",),
            vmem_limit_bytes=_VMEM_LIMIT,
        ),
        cost_estimate=cost,
    )(x2d, *weights_t)
    return tuple(outs)


# ------------------------ flash-style attention kernel -----------------------

def _flash_attn_kernel(q_ref, k_ref, v_ref, o_ref, m_ref, l_ref, acc_ref, *,
                       masked, tq, tk):
    qi = pl.program_id(1)
    ki = pl.program_id(2)

    @pl.when(ki == 0)
    def _():
        m_ref[...] = jnp.full(m_ref.shape, -jnp.inf, dtype=m_ref.dtype)
        l_ref[...] = jnp.zeros(l_ref.shape, dtype=l_ref.dtype)
        acc_ref[...] = jnp.zeros(acc_ref.shape, dtype=acc_ref.dtype)

    def tile_update(apply_mask):
        q = q_ref[0]                    # (H, tq, d_k); 1/sqrt(d_k) folded into Wq
        k = k_ref[0]                    # (H, tk, d_k)
        v = v_ref[0]                    # (H, tk, d_v)
        s = jnp.einsum("hqd,hkd->hqk", q, k, preferred_element_type=jnp.float32)
        if apply_mask:
            # Causal mask for the diagonal-band tile only (global row >= col).
            row = qi * tq + lax.broadcasted_iota(jnp.int32, s.shape, 1)
            col = ki * tk + lax.broadcasted_iota(jnp.int32, s.shape, 2)
            s = jnp.where(row >= col, s, -jnp.inf)
        m_prev = m_ref[...]
        m_new = jnp.maximum(m_prev, jnp.max(s, axis=-1, keepdims=True))
        alpha = jnp.exp(m_prev - m_new)
        p = jnp.exp(s - m_new)
        l_ref[...] = alpha * l_ref[...] + jnp.sum(p, axis=-1, keepdims=True)
        acc_ref[...] = alpha * acc_ref[...] + jnp.einsum(
            "hqk,hkd->hqd", p.astype(v.dtype), v,
            preferred_element_type=jnp.float32)
        m_ref[...] = m_new

    if masked:
        q_first = qi * tq
        q_last = q_first + (tq - 1)
        k_first = ki * tk
        k_last = k_first + (tk - 1)

        @pl.when(k_last <= q_first)                 # fully visible tile: no mask
        def _():
            tile_update(apply_mask=False)

        @pl.when(jnp.logical_and(k_first <= q_last, k_last > q_first))  # diagonal
        def _():
            tile_update(apply_mask=True)
        # Tiles with k_first > q_last are fully masked and skipped entirely
        # (halves FLOPs and exp() count for causal workloads).
    else:
        tile_update(apply_mask=False)

    @pl.when(ki == pl.num_programs(2) - 1)
    def _():
        # EUP reciprocal on the (H,tq,1) denominator, applied to the accumulator.
        inv = pl.reciprocal(l_ref[...], approx=True)
        o_ref[0] = (acc_ref[...] * inv).astype(o_ref.dtype)


def _flash_attention(q, k, v, *, masked, tq_max=256, tk_max=512):
    # q, k: (N, H, L, d_k);  v: (N, H, L, d_v)  (raw-view head layout)
    N, H, L, d_k = q.shape
    d_v = v.shape[-1]
    tq = _choose_tile(L, tq_max, 8)
    tk = _choose_tile(L, tk_max, 8)
    n_q, n_kv = L // tq, L // tk
    kernel = functools.partial(_flash_attn_kernel, masked=masked, tq=tq, tk=tk)

    itemsize = q.dtype.itemsize
    cost = pl.CostEstimate(
        flops=2 * N * H * L * L * (d_k + d_v),
        transcendentals=N * H * L * L,
        bytes_accessed=(q.size + (k.size + v.size) * n_q + N * H * L * d_v) * itemsize,
    )

    return pl.pallas_call(
        kernel,
        out_shape=jax.ShapeDtypeStruct((N, H, L, d_v), q.dtype),
        grid=(N, n_q, n_kv),
        in_specs=[
            pl.BlockSpec((1, H, tq, d_k), lambda b, qi, ki: (b, 0, qi, 0)),
            pl.BlockSpec((1, H, tk, d_k), lambda b, qi, ki: (b, 0, ki, 0)),
            pl.BlockSpec((1, H, tk, d_v), lambda b, qi, ki: (b, 0, ki, 0)),
        ],
        out_specs=pl.BlockSpec((1, H, tq, d_v), lambda b, qi, ki: (b, 0, qi, 0)),
        scratch_shapes=[
            pltpu.VMEM((H, tq, 1), jnp.float32),     # running max m
            pltpu.VMEM((H, tq, 1), jnp.float32),     # running denom l
            pltpu.VMEM((H, tq, d_v), jnp.float32),   # output accumulator
        ],
        compiler_params=pltpu.CompilerParams(
            dimension_semantics=("parallel", "parallel", "arbitrary"),
            vmem_limit_bytes=_VMEM_LIMIT,
        ),
        cost_estimate=cost,
    )(q, k, v)


# ------------------------------ module wrapper --------------------------------

class MultiHeadAttentionPallas:
    """Pallas port of the PyTorch MultiHeadAttention (default softmax, no bias)."""

    def __init__(self, embed_dim, num_heads, d_k=None, d_v=None, is_masked=False,
                 key=None, dtype=jnp.float32):
        if key is None:
            key = jax.random.PRNGKey(0)
        self.num_heads = num_heads
        self.head_dim = embed_dim // num_heads
        assert self.head_dim * num_heads == embed_dim
        self.is_masked = is_masked
        self.d_k = d_k if d_k is not None else self.head_dim
        self.d_v = d_v if d_v is not None else self.head_dim

        kq, kk, kv, ko = jax.random.split(key, 4)
        # nn.Linear weights have shape (out_features, in_features).
        s_in = 1.0 / math.sqrt(embed_dim)
        s_out = 1.0 / math.sqrt(num_heads * self.d_v)
        self.wq = jax.random.uniform(kq, (self.d_k * num_heads, embed_dim),
                                     minval=-s_in, maxval=s_in).astype(dtype)
        self.wk = jax.random.uniform(kk, (self.d_k * num_heads, embed_dim),
                                     minval=-s_in, maxval=s_in).astype(dtype)
        self.wv = jax.random.uniform(kv, (self.d_v * num_heads, embed_dim),
                                     minval=-s_in, maxval=s_in).astype(dtype)
        self.wo = jax.random.uniform(ko, (embed_dim, num_heads * self.d_v),
                                     minval=-s_out, maxval=s_out).astype(dtype)

        # Kernel-side parameters: pre-transposed to (in, out) so no per-tile XLU
        # transpose, and 1/sqrt(d_k) folded into Wq once at init.
        # TODO(synk): optionally store these as bf16 (MXU-native on v5e/v6e/v7x,
        # fp8 on v7x) with f32 accumulation; kept f32 to match the fp32 reference.
        scale = 1.0 / math.sqrt(self.d_k)
        self.wq_t = (self.wq * scale).T          # (E, H*d_k), pre-scaled
        self.wk_t = self.wk.T                    # (E, H*d_k)
        self.wv_t = self.wv.T                    # (E, H*d_v)
        self.wo_t = self.wo.T                    # (H*d_v, E)

    def __call__(self, x):
        N, L, E = x.shape
        H, d_k, d_v = self.num_heads, self.d_k, self.d_v

        x2d = x.reshape(N * L, E)
        # Fused QKV projection: one pallas_call, x read from HBM once, three
        # outputs (no wrapper-level column slices -> no HBM->HBM copies).
        q2d, k2d, v2d = _fused_linear(x2d, (self.wq_t, self.wk_t, self.wv_t))

        # Raw `.view(N, H, L, d)` head split (contiguous, flat order preserved
        # -> free metadata reshape, matches the PyTorch module exactly).
        q = q2d.reshape(N, H, L, d_k)
        k = k2d.reshape(N, H, L, d_k)
        v = v2d.reshape(N, H, L, d_v)

        attn = _flash_attention(q, k, v, masked=self.is_masked)  # (N, H, L, d_v)

        # Raw `.view(N, l, -1)` merge (free contiguous reshape).
        out2d = attn.reshape(N * L, H * d_v)
        (y2d,) = _fused_linear(out2d, (self.wo_t,))
        return y2d.reshape(N, L, E)


# --------------------------------- reference ----------------------------------

def _reference(mha: MultiHeadAttentionPallas, x):
    N, L, E = x.shape
    H, d_k, d_v = mha.num_heads, mha.d_k, mha.d_v
    q = (x @ mha.wq.T).reshape(N, H, L, d_k)
    k = (x @ mha.wk.T).reshape(N, H, L, d_k)
    v = (x @ mha.wv.T).reshape(N, H, L, d_v)
    s = jnp.einsum("nhqd,nhkd->nhqk", q, k) / math.sqrt(d_k)
    if mha.is_masked:
        mask = jnp.tril(jnp.ones((L, L), dtype=bool))
        s = jnp.where(mask, s, -jnp.inf)
    p = jax.nn.softmax(s, axis=-1)
    o = jnp.einsum("nhqk,nhkd->nhqd", p, v).reshape(N, L, H * d_v)
    return o @ mha.wo.T


# ----------------------------------- main --------------------------------------

if __name__ == "__main__":
    N, L, E, H = 2, 8, 32, 4   # batch, seq, embed_dim, num_heads -> d_k = d_v = 8

    key = jax.random.PRNGKey(0)
    kx, kw = jax.random.split(key)
    x = jax.random.normal(kx, (N, L, E), dtype=jnp.float32)

    for masked in (False, True):   # L == head_dim, so the masked path is valid
        mha = MultiHeadAttentionPallas(embed_dim=E, num_heads=H,
                                       is_masked=masked, key=kw)
        fwd = jax.jit(lambda inp, m=mha: m(inp))
        out = jax.block_until_ready(fwd(x))
        ref = _reference(mha, x)
        assert out.shape == (N, L, E)
        # 2e-3 tolerance: approx EUP reciprocal + folded 1/sqrt(d_k) + online
        # softmax reassociation vs. the plain f32 reference.
        assert jnp.allclose(out, ref, atol=2e-3, rtol=2e-3), \
            f"mismatch vs reference (masked={masked})"

    print("KERNEL_OK")
</pallas_src>

<mosaic_0001>
module attributes {stable_mosaic.version = 11 : i64} {
  func.func @_fused_linear_kernel(%arg0: i32, %arg1: memref<8x32xf32, #tpu.memory_space<vmem>>, %arg2: memref<32x32xf32, #tpu.memory_space<vmem>>, %arg3: memref<32x32xf32, #tpu.memory_space<vmem>>, %arg4: memref<32x32xf32, #tpu.memory_space<vmem>>, %arg5: memref<8x32xf32, #tpu.memory_space<vmem>>, %arg6: memref<8x32xf32, #tpu.memory_space<vmem>>, %arg7: memref<8x32xf32, #tpu.memory_space<vmem>>) attributes {dimension_semantics = [#tpu.dimension_semantics<parallel>], iteration_bounds = array<i64: 2>, scalar_prefetch = 0 : i64, scratch_operands = 0 : i64, tpu.core_type = #tpu.core_type<tc>, window_params = [{transform_indices = @transform_0, window_bounds = array<i64: 8, 32>}, {pipeline_mode = #tpu.pipeline_mode<synchronous>, transform_indices = @transform_1, window_bounds = array<i64: 32, 32>}, {pipeline_mode = #tpu.pipeline_mode<synchronous>, transform_indices = @transform_2, window_bounds = array<i64: 32, 32>}, {pipeline_mode = #tpu.pipeline_mode<synchronous>, transform_indices = @transform_3, window_bounds = array<i64: 32, 32>}, {transform_indices = @transform_4, window_bounds = array<i64: 8, 32>}, {transform_indices = @transform_5, window_bounds = array<i64: 8, 32>}, {transform_indices = @transform_6, window_bounds = array<i64: 8, 32>}]} {
    %c0 = arith.constant 0 : index
    %c0_0 = arith.constant 0 : index
    %0 = vector.load %arg1[%c0, %c0_0] : memref<8x32xf32, #tpu.memory_space<vmem>>, vector<8x32xf32>
    %c0_1 = arith.constant 0 : index
    %c0_2 = arith.constant 0 : index
    %1 = vector.load %arg2[%c0_1, %c0_2] : memref<32x32xf32, #tpu.memory_space<vmem>>, vector<32x32xf32>
    %cst = arith.constant dense<0.000000e+00> : vector<8x32xf32>
    %2 = tpu.matmul %0, %1, %cst {dimension_numbers = #tpu.dot_dimension_numbers<[1], [0], [0], [1], [0, 0, 1, 1], [], []>} : vector<8x32xf32>, vector<32x32xf32>, vector<8x32xf32> -> vector<8x32xf32>
    %c0_3 = arith.constant 0 : index
    %c0_4 = arith.constant 0 : index
    %3 = vector.load %arg5[%c0_3, %c0_4] : memref<8x32xf32, #tpu.memory_space<vmem>>, vector<8x32xf32>
    tpu.vector_store %arg5[%c0_3, %c0_4], %2 {strides = array<i32>} : memref<8x32xf32, #tpu.memory_space<vmem>>, vector<8x32xf32>,
    %c0_5 = arith.constant 0 : index
    %c0_6 = arith.constant 0 : index
    %4 = vector.load %arg3[%c0_5, %c0_6] : memref<32x32xf32, #tpu.memory_space<vmem>>, vector<32x32xf32>
    %cst_7 = arith.constant dense<0.000000e+00> : vector<8x32xf32>
    %5 = tpu.matmul %0, %4, %cst_7 {dimension_numbers = #tpu.dot_dimension_numbers<[1], [0], [0], [1], [0, 0, 1, 1], [], []>} : vector<8x32xf32>, vector<32x32xf32>, vector<8x32xf32> -> vector<8x32xf32>
    %c0_8 = arith.constant 0 : index
    %c0_9 = arith.constant 0 : index
    %6 = vector.load %arg6[%c0_8, %c0_9] : memref<8x32xf32, #tpu.memory_space<vmem>>, vector<8x32xf32>
    tpu.vector_store %arg6[%c0_8, %c0_9], %5 {strides = array<i32>} : memref<8x32xf32, #tpu.memory_space<vmem>>, vector<8x32xf32>,
    %c0_10 = arith.constant 0 : index
    %c0_11 = arith.constant 0 : index
    %7 = vector.load %arg4[%c0_10, %c0_11] : memref<32x32xf32, #tpu.memory_space<vmem>>, vector<32x32xf32>
    %cst_12 = arith.constant dense<0.000000e+00> : vector<8x32xf32>
    %8 = tpu.matmul %0, %7, %cst_12 {dimension_numbers = #tpu.dot_dimension_numbers<[1], [0], [0], [1], [0, 0, 1, 1], [], []>} : vector<8x32xf32>, vector<32x32xf32>, vector<8x32xf32> -> vector<8x32xf32>
    %c0_13 = arith.constant 0 : index
    %c0_14 = arith.constant 0 : index
    %9 = vector.load %arg7[%c0_13, %c0_14] : memref<8x32xf32, #tpu.memory_space<vmem>>, vector<8x32xf32>
    tpu.vector_store %arg7[%c0_13, %c0_14], %8 {strides = array<i32>} : memref<8x32xf32, #tpu.memory_space<vmem>>, vector<8x32xf32>,
    return
  }
  func.func @transform_0(%arg0: i32) -> (i32, i32) {
    %c0_i32 = arith.constant 0 : i32
    %c0_i32_0 = arith.constant 0 : i32
    return %arg0, %c0_i32 : i32, i32
  }
  func.func @transform_1(%arg0: i32) -> (i32, i32) {
    %c0_i32 = arith.constant 0 : i32
    %c0_i32_0 = arith.constant 0 : i32
    %c0_i32_1 = arith.constant 0 : i32
    return %c0_i32, %c0_i32_0 : i32, i32
  }
  func.func @transform_2(%arg0: i32) -> (i32, i32) {
    %c0_i32 = arith.constant 0 : i32
    %c0_i32_0 = arith.constant 0 : i32
    %c0_i32_1 = arith.constant 0 : i32
    return %c0_i32, %c0_i32_0 : i32, i32
  }
  func.func @transform_3(%arg0: i32) -> (i32, i32) {
    %c0_i32 = arith.constant 0 : i32
    %c0_i32_0 = arith.constant 0 : i32
    %c0_i32_1 = arith.constant 0 : i32
    return %c0_i32, %c0_i32_0 : i32, i32
  }
  func.func @transform_4(%arg0: i32) -> (i32, i32) {
    %c0_i32 = arith.constant 0 : i32
    %c0_i32_0 = arith.constant 0 : i32
    return %arg0, %c0_i32 : i32, i32
  }
  func.func @transform_5(%arg0: i32) -> (i32, i32) {
    %c0_i32 = arith.constant 0 : i32
    %c0_i32_0 = arith.constant 0 : i32
    return %arg0, %c0_i32 : i32, i32
  }
  func.func @transform_6(%arg0: i32) -> (i32, i32) {
    %c0_i32 = arith.constant 0 : i32
    %c0_i32_0 = arith.constant 0 : i32
    return %arg0, %c0_i32 : i32, i32
  }
}

module attributes {stable_mosaic.version = 11 : i64} {
  func.func @_flash_attn_kernel(%arg0: i32, %arg1: i32, %arg2: i32, %arg3: memref<1x4x8x8xf32, #tpu.memory_space<vmem>>, %arg4: memref<1x4x8x8xf32, #tpu.memory_space<vmem>>, %arg5: memref<1x4x8x8xf32, #tpu.memory_space<vmem>>, %arg6: memref<1x4x8x8xf32, #tpu.memory_space<vmem>>, %arg7: memref<4x8x1xf32, #tpu.memory_space<vmem>>, %arg8: memref<4x8x1xf32, #tpu.memory_space<vmem>>, %arg9: memref<4x8x8xf32, #tpu.memory_space<vmem>>) attributes {dimension_semantics = [#tpu.dimension_semantics<parallel>, #tpu.dimension_semantics<parallel>, #tpu.dimension_semantics<arbitrary>], iteration_bounds = array<i64: 2, 1, 1>, scalar_prefetch = 0 : i64, scratch_operands = 3 : i64, tpu.core_type = #tpu.core_type<tc>, window_params = [{transform_indices = @transform_0, window_bounds = array<i64: 1, 4, 8, 8>}, {transform_indices = @transform_1, window_bounds = array<i64: 1, 4, 8, 8>}, {transform_indices = @transform_2, window_bounds = array<i64: 1, 4, 8, 8>}, {transform_indices = @transform_3, window_bounds = array<i64: 1, 4, 8, 8>}]} {
    %c0_i32 = arith.constant 0 : i32
    %0 = arith.cmpi eq, %arg2, %c0_i32 : i32
    %1 = arith.extui %0 : i1 to i32
    %c0_i32_0 = arith.constant 0 : i32
    %2 = arith.cmpi ne, %1, %c0_i32_0 : i32
    scf.if %2 {
      %cst_35 = arith.constant 0xFF800000 : f32
      %35 = vector.broadcast %cst_35 : f32 to vector<4x8x1xf32>
      %c0_36 = arith.constant 0 : index
      %c0_37 = arith.constant 0 : index
      %c0_38 = arith.constant 0 : index
      %36 = vector.load %arg7[%c0_36, %c0_37, %c0_38] : memref<4x8x1xf32, #tpu.memory_space<vmem>>, vector<4x8x1xf32>
      tpu.vector_store %arg7[%c0_36, %c0_37, %c0_38], %35 {strides = array<i32>} : memref<4x8x1xf32, #tpu.memory_space<vmem>>, vector<4x8x1xf32>,
      %cst_39 = arith.constant 0.000000e+00 : f32
      %37 = vector.broadcast %cst_39 : f32 to vector<4x8x1xf32>
      %c0_40 = arith.constant 0 : index
      %c0_41 = arith.constant 0 : index
      %c0_42 = arith.constant 0 : index
      %38 = vector.load %arg8[%c0_40, %c0_41, %c0_42] : memref<4x8x1xf32, #tpu.memory_space<vmem>>, vector<4x8x1xf32>
      tpu.vector_store %arg8[%c0_40, %c0_41, %c0_42], %37 {strides = array<i32>} : memref<4x8x1xf32, #tpu.memory_space<vmem>>, vector<4x8x1xf32>,
      %cst_43 = arith.constant 0.000000e+00 : f32
      %39 = vector.broadcast %cst_43 : f32 to vector<4x8x8xf32>
      %c0_44 = arith.constant 0 : index
      %c0_45 = arith.constant 0 : index
      %c0_46 = arith.constant 0 : index
      %40 = vector.load %arg9[%c0_44, %c0_45, %c0_46] : memref<4x8x8xf32, #tpu.memory_space<vmem>>, vector<4x8x8xf32>
      tpu.vector_store %arg9[%c0_44, %c0_45, %c0_46], %39 {strides = array<i32>} : memref<4x8x8xf32, #tpu.memory_space<vmem>>, vector<4x8x8xf32>,
    } else {
    }
    %c0 = arith.constant 0 : index
    %c0_1 = arith.constant 0 : index
    %c0_2 = arith.constant 0 : index
    %c0_3 = arith.constant 0 : index
    %3 = vector.load %arg3[%c0, %c0_1, %c0_2, %c0_3] : memref<1x4x8x8xf32, #tpu.memory_space<vmem>>, vector<1x4x8x8xf32>
    %4 = vector.shape_cast %3 : vector<1x4x8x8xf32> to vector<4x8x8xf32>
    %c0_4 = arith.constant 0 : index
    %c0_5 = arith.constant 0 : index
    %c0_6 = arith.constant 0 : index
    %c0_7 = arith.constant 0 : index
    %5 = vector.load %arg4[%c0_4, %c0_5, %c0_6, %c0_7] : memref<1x4x8x8xf32, #tpu.memory_space<vmem>>, vector<1x4x8x8xf32>
    %6 = vector.shape_cast %5 : vector<1x4x8x8xf32> to vector<4x8x8xf32>
    %c0_8 = arith.constant 0 : index
    %c0_9 = arith.constant 0 : index
    %c0_10 = arith.constant 0 : index
    %c0_11 = arith.constant 0 : index
    %7 = vector.load %arg5[%c0_8, %c0_9, %c0_10, %c0_11] : memref<1x4x8x8xf32, #tpu.memory_space<vmem>>, vector<1x4x8x8xf32>
    %8 = vector.shape_cast %7 : vector<1x4x8x8xf32> to vector<4x8x8xf32>
    "tpu.trace_start"() <{level = 10 : i32, message = "hqd,hkd->hqk"}> : () -> ()
    %cst = arith.constant dense<0.000000e+00> : vector<4x8x8xf32>
    %9 = tpu.matmul %4, %6, %cst {dimension_numbers = #tpu.dot_dimension_numbers<[2], [2], [1], [1], [0, 0, 0, 1, 1, 1], [0], [0]>} : vector<4x8x8xf32>, vector<4x8x8xf32>, vector<4x8x8xf32> -> vector<4x8x8xf32>
    "tpu.trace_stop"() : () -> ()
    %c0_12 = arith.constant 0 : index
    %c0_13 = arith.constant 0 : index
    %c0_14 = arith.constant 0 : index
    %10 = vector.load %arg7[%c0_12, %c0_13, %c0_14] : memref<4x8x1xf32, #tpu.memory_space<vmem>>, vector<4x8x1xf32>
    %cst_15 = arith.constant dense<0xFF800000> : vector<4x8xf32>
    %11 = vector.multi_reduction <maximumf>, %9, %cst_15 [2] : vector<4x8x8xf32> to vector<4x8xf32>
    %12 = vector.shape_cast %11 : vector<4x8xf32> to vector<4x8x1xf32>
    %13 = arith.maximumf %10, %12 : vector<4x8x1xf32>
    %14 = arith.subf %10, %13 : vector<4x8x1xf32>
    %15 = math.exp %14 : vector<4x8x1xf32>
    %16 = vector.broadcast %13 : vector<4x8x1xf32> to vector<4x8x8xf32>
    %17 = arith.subf %9, %16 : vector<4x8x8xf32>
    %18 = math.exp %17 : vector<4x8x8xf32>
    %c0_16 = arith.constant 0 : index
    %c0_17 = arith.constant 0 : index
    %c0_18 = arith.constant 0 : index
    %19 = vector.load %arg8[%c0_16, %c0_17, %c0_18] : memref<4x8x1xf32, #tpu.memory_space<vmem>>, vector<4x8x1xf32>
    %20 = arith.mulf %15, %19 : vector<4x8x1xf32>
    %cst_19 = arith.constant dense<0.000000e+00> : vector<4x8xf32>
    %21 = vector.multi_reduction <add>, %18, %cst_19 [2] : vector<4x8x8xf32> to vector<4x8xf32>
    %22 = vector.shape_cast %21 : vector<4x8xf32> to vector<4x8x1xf32>
    %23 = arith.addf %20, %22 : vector<4x8x1xf32>
    %c0_20 = arith.constant 0 : index
    %c0_21 = arith.constant 0 : index
    %c0_22 = arith.constant 0 : index
    %24 = vector.load %arg8[%c0_20, %c0_21, %c0_22] : memref<4x8x1xf32, #tpu.memory_space<vmem>>, vector<4x8x1xf32>
    tpu.vector_store %arg8[%c0_20, %c0_21, %c0_22], %23 {strides = array<i32>} : memref<4x8x1xf32, #tpu.memory_space<vmem>>, vector<4x8x1xf32>,
    %c0_23 = arith.constant 0 : index
    %c0_24 = arith.constant 0 : index
    %c0_25 = arith.constant 0 : index
    %25 = vector.load %arg9[%c0_23, %c0_24, %c0_25] : memref<4x8x8xf32, #tpu.memory_space<vmem>>, vector<4x8x8xf32>
    %26 = vector.broadcast %15 : vector<4x8x1xf32> to vector<4x8x8xf32>
    %27 = arith.mulf %26, %25 : vector<4x8x8xf32>
    "tpu.trace_start"() <{level = 10 : i32, message = "hqk,hkd->hqd"}> : () -> ()
    %cst_26 = arith.constant dense<0.000000e+00> : vector<4x8x8xf32>
    %28 = tpu.matmul %18, %8, %cst_26 {dimension_numbers = #tpu.dot_dimension_numbers<[2], [1], [1], [2], [0, 0, 0, 1, 1, 2], [0], [0]>} : vector<4x8x8xf32>, vector<4x8x8xf32>, vector<4x8x8xf32> -> vector<4x8x8xf32>
    "tpu.trace_stop"() : () -> ()
    %29 = arith.addf %27, %28 : vector<4x8x8xf32>
    %c0_27 = arith.constant 0 : index
    %c0_28 = arith.constant 0 : index
    %c0_29 = arith.constant 0 : index
    %30 = vector.load %arg9[%c0_27, %c0_28, %c0_29] : memref<4x8x8xf32, #tpu.memory_space<vmem>>, vector<4x8x8xf32>
    tpu.vector_store %arg9[%c0_27, %c0_28, %c0_29], %29 {strides = array<i32>} : memref<4x8x8xf32, #tpu.memory_space<vmem>>, vector<4x8x8xf32>,
    %c0_30 = arith.constant 0 : index
    %c0_31 = arith.constant 0 : index
    %c0_32 = arith.constant 0 : index
    %31 = vector.load %arg7[%c0_30, %c0_31, %c0_32] : memref<4x8x1xf32, #tpu.memory_space<vmem>>, vector<4x8x1xf32>
    tpu.vector_store %arg7[%c0_30, %c0_31, %c0_32], %13 {strides = array<i32>} : memref<4x8x1xf32, #tpu.memory_space<vmem>>, vector<4x8x1xf32>,
    %c0_i32_33 = arith.constant 0 : i32
    %32 = arith.cmpi eq, %arg2, %c0_i32_33 : i32
    %33 = arith.extui %32 : i1 to i32
    %c0_i32_34 = arith.constant 0 : i32
    %34 = arith.cmpi ne, %33, %c0_i32_34 : i32
    scf.if %34 {
      %c0_35 = arith.constant 0 : index
      %c0_36 = arith.constant 0 : index
      %c0_37 = arith.constant 0 : index
      %35 = vector.load %arg8[%c0_35, %c0_36, %c0_37] : memref<4x8x1xf32, #tpu.memory_space<vmem>>, vector<4x8x1xf32>
      %36 = tpu.reciprocal %35 {approx = true} : vector<4x8x1xf32> -> vector<4x8x1xf32>
      %c0_38 = arith.constant 0 : index
      %c0_39 = arith.constant 0 : index
      %c0_40 = arith.constant 0 : index
      %37 = vector.load %arg9[%c0_38, %c0_39, %c0_40] : memref<4x8x8xf32, #tpu.memory_space<vmem>>, vector<4x8x8xf32>
      %38 = vector.broadcast %36 : vector<4x8x1xf32> to vector<4x8x8xf32>
      %39 = arith.mulf %37, %38 : vector<4x8x8xf32>
      %c0_41 = arith.constant 0 : index
      %c0_42 = arith.constant 0 : index
      %c0_43 = arith.constant 0 : index
      %c0_44 = arith.constant 0 : index
      %40 = vector.load %arg6[%c0_41, %c0_42, %c0_43, %c0_44] : memref<1x4x8x8xf32, #tpu.memory_space<vmem>>, vector<1x4x8x8xf32>
      %41 = vector.shape_cast %40 : vector<1x4x8x8xf32> to vector<4x8x8xf32>
      %42 = vector.shape_cast %39 : vector<4x8x8xf32> to vector<1x4x8x8xf32>
      tpu.vector_store %arg6[%c0_41, %c0_42, %c0_43, %c0_44], %42 {strides = array<i32>} : memref<1x4x8x8xf32, #tpu.memory_space<vmem>>, vector<1x4x8x8xf32>,
    } else {
    }
    return
  }
  func.func @transform_0(%arg0: i32, %arg1: i32, %arg2: i32) -> (i32, i32, i32, i32) {
    %c0_i32 = arith.constant 0 : i32
    %c0_i32_0 = arith.constant 0 : i32
    %c0_i32_1 = arith.constant 0 : i32
    return %arg0, %c0_i32, %arg1, %c0_i32_0 : i32, i32, i32, i32
  }
  func.func @transform_1(%arg0: i32, %arg1: i32, %arg2: i32) -> (i32, i32, i32, i32) {
    %c0_i32 = arith.constant 0 : i32
    %c0_i32_0 = arith.constant 0 : i32
    %c0_i32_1 = arith.constant 0 : i32
    return %arg0, %c0_i32, %arg2, %c0_i32_0 : i32, i32, i32, i32
  }
  func.func @transform_2(%arg0: i32, %arg1: i32, %arg2: i32) -> (i32, i32, i32, i32) {
    %c0_i32 = arith.constant 0 : i32
    %c0_i32_0 = arith.constant 0 : i32
    %c0_i32_1 = arith.constant 0 : i32
    return %arg0, %c0_i32, %arg2, %c0_i32_0 : i32, i32, i32, i32
  }
  func.func @transform_3(%arg0: i32, %arg1: i32, %arg2: i32) -> (i32, i32, i32, i32) {
    %c0_i32 = arith.constant 0 : i32
    %c0_i32_0 = arith.constant 0 : i32
    %c0_i32_1 = arith.constant 0 : i32
    return %arg0, %c0_i32, %arg1, %c0_i32_0 : i32, i32, i32, i32
  }
}

module attributes {stable_mosaic.version = 11 : i64} {
  func.func @_fused_linear_kernel(%arg0: i32, %arg1: memref<8x32xf32, #tpu.memory_space<vmem>>, %arg2: memref<32x32xf32, #tpu.memory_space<vmem>>, %arg3: memref<8x32xf32, #tpu.memory_space<vmem>>) attributes {dimension_semantics = [#tpu.dimension_semantics<parallel>], iteration_bounds = array<i64: 2>, scalar_prefetch = 0 : i64, scratch_operands = 0 : i64, tpu.core_type = #tpu.core_type<tc>, window_params = [{transform_indices = @transform_0, window_bounds = array<i64: 8, 32>}, {pipeline_mode = #tpu.pipeline_mode<synchronous>, transform_indices = @transform_1, window_bounds = array<i64: 32, 32>}, {transform_indices = @transform_2, window_bounds = array<i64: 8, 32>}]} {
    %c0 = arith.constant 0 : index
    %c0_0 = arith.constant 0 : index
    %0 = vector.load %arg1[%c0, %c0_0] : memref<8x32xf32, #tpu.memory_space<vmem>>, vector<8x32xf32>
    %c0_1 = arith.constant 0 : index
    %c0_2 = arith.constant 0 : index
    %1 = vector.load %arg2[%c0_1, %c0_2] : memref<32x32xf32, #tpu.memory_space<vmem>>, vector<32x32xf32>
    %cst = arith.constant dense<0.000000e+00> : vector<8x32xf32>
    %2 = tpu.matmul %0, %1, %cst {dimension_numbers = #tpu.dot_dimension_numbers<[1], [0], [0], [1], [0, 0, 1, 1], [], []>} : vector<8x32xf32>, vector<32x32xf32>, vector<8x32xf32> -> vector<8x32xf32>
    %c0_3 = arith.constant 0 : index
    %c0_4 = arith.constant 0 : index
    %3 = vector.load %arg3[%c0_3, %c0_4] : memref<8x32xf32, #tpu.memory_space<vmem>>, vector<8x32xf32>
    tpu.vector_store %arg3[%c0_3, %c0_4], %2 {strides = array<i32>} : memref<8x32xf32, #tpu.memory_space<vmem>>, vector<8x32xf32>,
    return
  }
  func.func @transform_0(%arg0: i32) -> (i32, i32) {
    %c0_i32 = arith.constant 0 : i32
    %c0_i32_0 = arith.constant 0 : i32
    return %arg0, %c0_i32 : i32, i32
  }
  func.func @transform_1(%arg0: i32) -> (i32, i32) {
    %c0_i32 = arith.constant 0 : i32
    %c0_i32_0 = arith.constant 0 : i32
    %c0_i32_1 = arith.constant 0 : i32
    return %c0_i32, %c0_i32_0 : i32, i32
  }
  func.func @transform_2(%arg0: i32) -> (i32, i32) {
    %c0_i32 = arith.constant 0 : i32
    %c0_i32_0 = arith.constant 0 : i32
    return %arg0, %c0_i32 : i32, i32
  }
}

</mosaic_0001>

<bundles_post_ra>
// kernel: _lambda_.3
= control target key start
LH: loop header
LB: loop body
LE: loop exit
PB: predicated region body
PF: predicated region fallthrough
CT: control target
= control target key end

     0   :  { %12 = vsyncpa [#allocation3], 0  ;;  %s1011_s0 = inlined_call_operand.hbm [shape: f32[16,32], index: 0, kind: input, shape index: {}]   ;;  %s1012_s1 = inlined_call_operand.hbm [shape: f32[32,32], index: 1, kind: input, shape index: {}]   ;;  %s1013_s2 = inlined_call_operand.hbm [shape: f32[32,32], index: 2, kind: input, shape index: {}]   ;;  %s1014_s3 = inlined_call_operand.hbm [shape: f32[32,32], index: 3, kind: input, shape index: {}]   ;;  %s1015_s4 = inlined_call_operand.vmem [shape: f32[16,32], index: 4, kind: output, shape index: {0}]   ;;  %s1016_s5 = inlined_call_operand.vmem [shape: f32[16,32], index: 5, kind: output, shape index: {1}]   ;;  %s1017_s6 = inlined_call_operand.vmem [shape: f32[16,32], index: 6, kind: output, shape index: {2}]  }
   0x1   :  { %14 = vsyncpa [#allocation3 + $0x1], 0 }
   0x2   :  { %15 = vsyncpa [#allocation5], 0 }
   0x3   :  { %16 = vsyncpa [#allocation8], 0  ;;  %s873_s21 = smov 0   ;;  %s875_s22 = smov 0  }
   0x4   :  { %s877_s23 = smov 0   ;;  %s879_s24 = smov 0  }
   0x5 LB: > { %s205_s27 = sshll.u32 %s1012_s1, 4  ;;  %s897_s28 = sadd.s32 4294967295, %s831_s24   ;;  %s831_s24 = sphi %s879_s24, %s1025_s24   ;;  %s827_s23 = sphi %s877_s23, %s1024_s23   ;;  %s823_s22 = sphi %s875_s22, %s1023_s22   ;;  %s819_s21 = sphi %s873_s21, %s1022_s21   ;;  %s206_s27 = int_to_ptr.hbm [resolvable:$true] %s205_s27 }
   0x6   : > { %p577_p0 = scmp.ge.s32.totalorder %s831_s24, 1  ;;  %p43_p1 = scmp.eq.s32.totalorder %s897_s28, 0 }
   0x7   : > { %p194_p2 = scmp.lt.s32.totalorder %s831_s24, 3  ;;  %s833_s30 = smov [#allocation4]  }
   0x8   : > { %s207_s7 = sshll.u32 %s833_s30, 4  ;;  %s219_s10 = sshll.u32 %s1013_s2, 4  ;;  %s208_s7 = int_to_ptr.vmem [resolvable:$true] %s207_s7  ;;  %s220_s10 = int_to_ptr.hbm [resolvable:$true] %s219_s10 }
   0x9   : > { %p902_p3 = pnand %p577_p0, %p194_p2  ;;  %s233_s14 = sshll.u32 %s1014_s3, 4  ;;  %s234_s14 = int_to_ptr.hbm [resolvable:$true] %s233_s14 }
   0xa   : > { %s834_s15 = smov [#allocation6]   ;;  %s835_s17 = smov 128  }
   0xb   : > { %p611_p4 = pneg %p902_p3  ;;  %s221_s16 = sshll.u32 %s834_s15, 4  ;;  %s222_s16 = int_to_ptr.vmem [resolvable:$true] %s221_s16 }
   0xc   : > { %s836_s18 = smov 8   ;;  %s837_s19 = smov [#allocation7]  }
   0xd   : > { %p913_p5 = pnand %p611_p4, %p43_p1  ;;  %s235_s20 = sshll.u32 %s837_s19, 4  ;;  %s236_s20 = int_to_ptr.vmem [resolvable:$true] %s235_s20 }
   0xe   : > { %s927_s25 = sadd.s32 1, %s831_s24   ;;  %s29_s30 = sadd.s32 1, %s827_s23 }
   0xf   : > { %614 = dma.hbm_to_vmem [thread:$0]  (!%p913_p5), %s206_s27, 512, %s208_s7, [#allocation5], %s835_s17, %s835_s17, %s836_s18  }
  0x10   : > { %617 = dma.hbm_to_vmem [thread:$0]  (!%p913_p5), %s220_s10, 512, %s222_s16, [#allocation5], %s835_s17, %s835_s17, %s836_s18  }
  0x11   : > { %620 = dma.hbm_to_vmem [thread:$0]  (!%p913_p5), %s234_s14, 512, %s236_s20, [#allocation8], %s835_s17, %s835_s17, %s836_s18  }
  0x12   : > { %s26_s26 = ssub.s32 %s831_s24, %s927_s25  ;;  %p36_p7 = scmp.ne.s32.totalorder %s827_s23, %s823_s22 }
  0x13   : > { %p27_p6 = scmp.eq.s32.totalorder %s26_s26, 0  ;;  %p37_p8 = scmp.eq.s32.totalorder %s831_s24, 0 }
  0x14   : > { %p42_p9 = scmp.ne.s32.totalorder %s823_s22, %s819_s21  ;;  %p628_p12 = scmp.lt.s32.totalorder %s831_s24, 2 }
  0x15   : > { %s938_s27 = scalar_select %p27_p6, %s827_s23, %s29_s30  }
  0x16   : > { %p38_p10 = por %p37_p8, %p36_p7  ;;  %p942_p11 = por %p43_p1, %p42_p9 }
  0x17   : > { %s249_s8 = sand.u32 1, %s827_s23   ;;  %s583_s10 = sshll.u32 %s831_s24, 3 }
  0x18   : > { %s582_s9 = sshll.u32 %s249_s8, 3  ;;  %s257_s13 = scalar_lea.hbm %s1011_s0, %s583_s10 }
  0x19   : > { %s253_s14 = scalar_lea.vmem [#allocation2], %s582_s9  ;;  %s259_s16 = sshll.u32 %s257_s13, 4  ;;  %s260_s16 = int_to_ptr.hbm [resolvable:$true] %s259_s16 }
  0x1a   : > { %s261_s15 = sshll.u32 %s253_s14, 4  ;;  %p952_p13 = pnand %p628_p12, %p38_p10  ;;  %s262_s15 = int_to_ptr.vmem [resolvable:$true] %s261_s15 }
  0x1b   : > { %s250_s17 = scalar_lea.sflag [#allocation3], %s249_s8  ;;  %s759_s18 = sshra.s32 %s260_s16, 4  ;;  %s760_s18 = int_to_ptr.hbm [resolvable:$true] %s759_s18 }
  0x1c   : > { %s761_s19 = scalar_lea.hbm %s760_s18, 8  ;;  %p763_p2 = pneg %p952_p13 }
  0x1d   : > { %p762_p0 = scmp.ne.s32.totalorder %s760_s18, %s761_s19  ;;  %s766_s26 = scalar_lea.hbm %s1011_s0, 16 }
  0x1e   : > { %p767_p6 = scmp.lt.s32.totalorder %s760_s18, %s1011_s0  ;;  %p768_p7 = scmp.lt.s32.totalorder %s766_s26, %s761_s19 }
  0x1f   : > { %p764_p4 = pnand %p763_p2, %p762_p0 }
  0x20   : > { %p769_p8 = por %p768_p7, %p767_p6 }
  0x21   : > { %p765_p5 = pneg %p764_p4 }
  0x23   : > { %p770_p9 = pnand %p769_p8, %p765_p5 }
  0x25   : > { %773 = shalt.err (!%p770_p9)
}
  0x26   : > { %624 = dma.hbm_to_vmem [thread:$0]  (!%p952_p13), %s260_s16, 128, %s262_s15, %s250_s17  }
  0x27   : > { %270 = sbr.rel (%p902_p3) target bundleno = 190 (0xbe), region = 36  ;;  %s272_s8 = sand.u32 (!%p902_p3), 1, %s823_s22  }
  0x28   : > { %s585_s10 = sshll.u32 (!%p902_p3), %s272_s8, 3  ;;  %s273_s11 = scalar_lea.sflag (!%p902_p3), [#allocation3], %s272_s8 }
  0x29   : > { %s276_s12 = scalar_lea.vmem (!%p902_p3), [#allocation2], %s585_s10 }
  0x2c   : > { %806 = dma.done.wait (%p942_p11), %s273_s11, 128  }
  0x2d   : > { %808 = vsyncadd (%p942_p11), %s273_s11, 4294967168 }
  0x2e   : > { %810 = dma.done.wait (%p43_p1), [#allocation5], 1024  }
  0x2f   : > { %812 = vsyncadd (%p43_p1), [#allocation5], 4294966272 }
  0x30   : > { %814 = dma.done.wait (%p43_p1), [#allocation8], 512  }
  0x31   : > { %816 = vsyncadd (%p43_p1), [#allocation8], 4294966784  ;;  %v398_v0 = vld [vmem:[#allocation7 + $0x18] sm:$0xff]  ;;  %v397_v1 = vld [vmem:[#allocation7 + $0x10] sm:$0xff]  ;;  %vm345_vm0 = vcmask 261120   ;;  %p328_p1 = scmp.lt.s32.totalorder %s897_s28, 1 }
  0x32   : > { %411 = vmatpush.msra.mxu2 %v398_v0  ;;  %v344_v2 = vld [vmem:[#allocation4 + $0x18] sm:$0xff]  ;;  %v396_v4 = vld [vmem:[#allocation7 + $0x8] sm:$0xff]  ;;  %v343_v5 = vld [vmem:[#allocation4 + $0x10] sm:$0xff] }
  0x33   : > { %v373_v3 = vld [vmem:[#allocation6 + $0x18] sm:$0xff]  ;;  %361 = vmatpush.msra.mxu0 %v344_v2  ;;  %v372_v6 = vld [vmem:[#allocation6 + $0x10] sm:$0xff]  ;;  %v342_v7 = vld [vmem:[#allocation4 + $0x8] sm:$0xff]  ;;  %s1027_s28 = smov (!%p328_p1, %s897_s28), 1 }
  0x34   : > { %386 = vmatpush.msra.mxu1 %v373_v3  ;;  %412 = vmatpush.msra.mxu2 %v397_v1  ;;  %v371_v8 = vld [vmem:[#allocation6 + $0x8] sm:$0xff]  ;;  %v395_v9 = vld [vmem:[#allocation7] sm:$0xff]  ;;  %v340_v10 = vld [vmem:[%s276_s12] sm:$0xff]  ;;  %s589_s29 = sshll.u32 %s1027_s28, 3 }
  0x35   : > { %362 = vmatpush.msra.mxu0 %v343_v5  ;;  %v341_v11 = vld [vmem:[#allocation4] sm:$0xff]  ;;  %s331_s14 = scalar_lea.vmem %s1015_s4, %s589_s29  ;;  %s335_s21 = scalar_lea.vmem %s1016_s5, %s589_s29 }
  0x36   : > { %387 = vmatpush.msra.mxu1 %v372_v6  ;;  %413 = vmatpush.msra.mxu2 %v396_v4  ;;  %v370_v12 = vld [vmem:[#allocation6] sm:$0xff]  ;;  %s339_s19 = scalar_lea.vmem %s1017_s6, %s589_s29 }
  0x37   : > { %363 = vmatpush.msra.mxu0 %v342_v7 }
  0x38   : > { %388 = vmatpush.msra.mxu1 %v371_v8  ;;  %414 = vmatpush.msra.mxu2 %v395_v9 }
  0x39   : > { %594 = vmatmul.msk.f32.vlgmr.msra.gmra.mxu2 %vm345_vm0, %v340_v10  ;;  %364 = vmatpush.msra.mxu0 %v341_v11 }
  0x3a   : > { %389 = vmatpush.msra.mxu1 %v370_v12  ;;  %592 = vmatmul.msk.f32.vlgmr.msra.gmra.mxu0 %vm345_vm0, %v340_v10 }
  0x3b   : > { %593 = vmatmul.msk.f32.vlgmr.msra.gmra.mxu1 %vm345_vm0, %v340_v10 }
  0xb7   : > { %v366_v13 = vpop.f32.mrf.mxu0 }
  0xb8   : > { %369 = vst.msk [vmem:[%s331_s14] sm:$0xff] %vm345_vm0, %v366_v13  ;;  %v391_v14 = vpop.f32.mrf.mxu1 }
  0xb9   : > { %394 = vst.msk [vmem:[%s335_s21] sm:$0xff] %vm345_vm0, %v391_v14 }
  0xbc   : > { %v416_v15 = vpop.f32.mrf.mxu2 }
  0xbd   : > { %419 = vst.msk [vmem:[%s339_s19] sm:$0xff] %vm345_vm0, %v416_v15 }
  0xbe PF: > { %p19_p3 = scmp.ge.s32.totalorder %s927_s25, 4   ;;  %s1022_s21 = smov %s823_s22 }
  0xbf   : > { %s1023_s22 = smov %s827_s23  ;;  %s1024_s23 = smov %s938_s27 }
  0xc0   : > { %s1025_s24 = smov %s927_s25  ;;  %21 = sbr.rel (!%p19_p3) target bundleno = 5 (0x5), region = 112 }
  0xc5   :  { %467 = vsyncpa [#allocation3], 1 }
  0xc6   :  { %469 = vsyncpa [#allocation3 + $0x1], 1 }
  0xc7   :  { %470 = vsyncpa [#allocation5], 1 }
  0xc8   :  { %471 = vsyncpa [#allocation8], 1 }

// kernel: _lambda_.5
= control target key start
LH: loop header
LB: loop body
LE: loop exit
PB: predicated region body
PF: predicated region fallthrough
CT: control target
= control target key end

     0   :  { %7 = vsyncpa [#allocation3], 0  ;;  %s470_s0 = inlined_call_operand.vmem [shape: f32[16,32], index: 0, kind: input, shape index: {}]   ;;  %s471_s1 = inlined_call_operand.vmem [shape: f32[32,32], index: 1, kind: input, shape index: {}]   ;;  %s472_s2 = inlined_call_operand.hbm [shape: f32[16,32], index: 2, kind: output, shape index: {}]  }
   0x1   :  { %9 = vsyncpa [#allocation3 + $0x1], 0  ;;  %s373_s9 = smov 0   ;;  %s375_s10 = smov 0  }
   0x2   :  { %s377_s11 = smov 0   ;;  %s379_s12 = smov 0  }
   0x3 LB: > { %s394_s13 = sadd.s32 4294967295, %s356_s12   ;;  %s244_s14 = sadd.s32 4294967294, %s356_s12   ;;  %s356_s12 = sphi %s379_s12, %s478_s12   ;;  %s352_s11 = sphi %s377_s11, %s477_s11   ;;  %s348_s10 = sphi %s375_s10, %s476_s10   ;;  %s344_s9 = sphi %s373_s9, %s475_s9  }
   0x4   : > { %s398_s15 = sadd.s32 1, %s356_s12   ;;  %s69_s16 = sadd.s32 1, %s352_s11 }
   0x5   : > { %s66_s17 = ssub.s32 %s356_s12, %s398_s15  ;;  %p79_p0 = scmp.ne.s32.totalorder %s352_s11, %s348_s10 }
   0x6   : > { %p67_p1 = scmp.eq.s32.totalorder %s66_s17, 0  ;;  %p80_p2 = scmp.eq.s32.totalorder %s394_s13, 1 }
   0x7   : > { %p85_p3 = scmp.ne.s32.totalorder %s348_s10, %s344_s9  ;;  %p86_p4 = scmp.eq.s32.totalorder %s244_s14, 1 }
   0x8   : > { %s409_s18 = scalar_select %p67_p1, %s352_s11, %s69_s16  }
   0x9   : > { %p411_p5 = por %p80_p2, %p79_p0  ;;  %p415_p6 = por %p86_p4, %p85_p3 }
   0xa   : > { %p247_p7 = scmp.ge.s32.totalorder %s356_s12, 1  ;;  %p114_p8 = scmp.lt.s32.totalorder %s356_s12, 3 }
   0xc   : > { %p115_p9 = pnand %p247_p7, %p114_p8 }
   0xd   : > { %p135_p10 = scmp.lt.s32.totalorder (!%p115_p9), %s394_s13, 1  ;;  %s132_s6 = sand.u32 (!%p115_p9), 1, %s348_s10  }
   0xe   : > { %118 = sbr.rel (%p115_p9) target bundleno = 156 (0x9c), region = 28  ;;  %s248_s7 = sshll.u32 (!%p115_p9), %s132_s6, 3 }
   0xf   : > { %s252_s8 = sshll.u32 (!%p115_p9), %s394_s13, 3  ;;  %s134_s21 = scalar_lea.vmem (!%p115_p9), [#allocation2], %s248_s7 }
  0x10   : > { %s180_s17 = scalar_lea.hbm (!%p115_p9), %s472_s2, %s252_s8  ;;  %s182_s22 = sshll.u32 (!%p115_p9), %s134_s21, 4  ;;  %s183_s22 = int_to_ptr.vmem [resolvable:$true] %s182_s22 }
  0x11   : > { %s184_s23 = sshll.u32 (!%p115_p9), %s180_s17, 4  ;;  %s170_s24 = scalar_lea.sflag (!%p115_p9), [#allocation3], %s132_s6  ;;  %s185_s23 = int_to_ptr.hbm [resolvable:$true] %s184_s23 }
  0x12   : > { %s308_s25 = sshra.s32 (!%p115_p9), %s185_s23, 4  ;;  %s314_s28 = scalar_lea.hbm (!%p115_p9), %s472_s2, 16  ;;  %s309_s25 = int_to_ptr.hbm [resolvable:$true] %s308_s25 }
  0x13   : > { %v143_v0 = vld [vmem:[%s471_s1 + $0x18] sm:$0xff]  ;;  %v142_v1 = vld [vmem:[%s471_s1 + $0x10] sm:$0xff]  ;;  %v141_v2 = vld [vmem:[%s471_s1 + $0x8] sm:$0xff]  ;;  %s136_s27 = scalar_select %p135_p10, %s394_s13, 1  ;;  %vm144_vm0 = vcmask 261120  }
  0x14   : > { %160 = vmatpush.msra.mxu0 %v143_v0  ;;  %v140_v3 = vld [vmem:[%s471_s1] sm:$0xff]  ;;  %s310_s26 = scalar_lea.hbm %s309_s25, 8  ;;  %p315_p0 = scmp.lt.s32.totalorder %s309_s25, %s472_s2 }
  0x15   : > { %s249_s30 = sshll.u32 %s136_s27, 3  ;;  %p311_p11 = scmp.ne.s32.totalorder %s309_s25, %s310_s26 }
  0x16   : > { %161 = vmatpush.msra.mxu0 %v142_v1  ;;  %s138_s5 = scalar_lea.vmem %s470_s0, %s249_s30  ;;  %p316_p1 = scmp.lt.s32.totalorder %s314_s28, %s310_s26 }
  0x17   : > { %v139_v4 = vld [vmem:[%s138_s5] sm:$0xff]  ;;  %p312_p12 = pnand %p311_p11, %p411_p5 }
  0x18   : > { %162 = vmatpush.msra.mxu0 %v141_v2  ;;  %p317_p2 = por %p316_p1, %p315_p0 }
  0x19   : > { %p313_p13 = pneg %p312_p12 }
  0x1a   : > { %163 = vmatpush.msra.mxu0 %v140_v3 }
  0x1b   : > { %250 = vmatmul.msk.f32.vlgmr.msra.gmra.mxu0 %vm144_vm0, %v139_v4  ;;  %p318_p3 = pnand %p317_p2, %p313_p13 }
  0x98   : > { %v165_v5 = vpop.f32.mrf.mxu0 }
  0x99   : > { %168 = vst.msk [vmem:[%s134_s21] sm:$0xff] %vm144_vm0, %v165_v5 }
  0x9a   : > { %321 = shalt.err (!%p318_p3)
}
  0x9b   : > { %255 = dma.vmem_to_hbm [thread:$0]  (%p411_p5), %s183_s22, 128, %s185_s23, %s170_s24  }
  0x9c PF: > { %p261_p4 = scmp.ge.s32.totalorder %s356_s12, 2  ;;  %s196_s3 = sand.u32 1, %s344_s9  }
  0x9d   : > { %s197_s4 = scalar_lea.sflag [#allocation3], %s196_s3 }
  0x9e   : > { %p258_p7 = pnand %p261_p4, %p415_p6 }
  0xa0   : > { %p259_p8 = pneg %p258_p7 }
  0xa2   : > { %339 = dma.done.wait (%p259_p8), %s197_s4, 128  }
  0xa3   : > { %341 = vsyncadd (%p259_p8), %s197_s4, 4294967168  ;;  %p12_p9 = scmp.ge.s32.totalorder %s398_s15, 4   ;;  %s475_s9 = smov %s348_s10 }
  0xa4   : > { %s476_s10 = smov %s352_s11  ;;  %s477_s11 = smov %s409_s18 }
  0xa5   : > { %s478_s12 = smov %s398_s15  ;;  %14 = sbr.rel (!%p12_p9) target bundleno = 3 (0x3), region = 63 }
  0xaa   :  { %203 = vsyncpa [#allocation3], 1 }
  0xab   :  { %205 = vsyncpa [#allocation3 + $0x1], 1 }

// kernel: _lambda_.4
= control target key start
LH: loop header
LB: loop body
LE: loop exit
PB: predicated region body
PF: predicated region fallthrough
CT: control target
= control target key end

     0   :  { %s928_s12 = smov 0   ;;  %s930_s13 = smov 0   ;;  %s1033_s0 = inlined_call_operand.vmem [shape: f32[2,4,8,8], index: 0, kind: input, shape index: {}]   ;;  %s1034_s1 = inlined_call_operand.vmem [shape: f32[2,4,8,8], index: 1, kind: input, shape index: {}]   ;;  %s1035_s2 = inlined_call_operand.vmem [shape: f32[2,4,8,8], index: 2, kind: input, shape index: {}]   ;;  %s1036_s3 = inlined_call_operand.vmem [shape: f32[2,4,8,8], index: 3, kind: output, shape index: {}]  }
   0x1   :  { %s932_s14 = smov 0  }
   0x2 LB: > { %s32_s15 = sadd.s32 1, %s899_s13  ;;  %p800_p0 = scmp.ge.s32.totalorder %s903_s14, 1  ;;  %s903_s14 = sphi %s932_s14, %s13_s14   ;;  %s899_s13 = sphi %s930_s13, %s1038_s13   ;;  %s895_s12 = sphi %s928_s12, %s1037_s12  }
   0x3   : > { %p34_p1 = scmp.ge.s32.totalorder %s32_s15, 2  ;;  %p193_p2 = scmp.lt.s32.totalorder %s903_s14, 3 }
   0x5   : > { %s1040_s15 = smov (%p34_p1, %s32_s15), 0  ;;  %p194_p3 = pnand %p800_p0, %p193_p2 }
   0x6   : > { %p239_p4 = scmp.lt.s32.totalorder (!%p194_p3), %s895_s12, 1 }
   0x7   : > { %197 = sbr.rel (%p194_p3) target bundleno = 691 (0x2b3), region = 32 }
   0xc   : > { %s1042_s12 = smov (!%p239_p4, %s895_s12), 1  ;;  %vm284_vm0 = vcmask 64512   ;;  %vm275_vm1 = vcmask 7168   ;;  %v905_v8 = vmov -inf   ;;  %v906_v17 = vmov 0  }
   0xd   : > { %s946_s16 = sshll.u32 %s1042_s12, 5  ;;  %276 = vst.msk [vmem:[#allocation2] sm:$0xff] %vm275_vm1, %v905_v8  ;;  %854 = vset.pattern.permute.xlu0 %v906_v17  ;;  %856 = vset.pattern.permute.xlu2 %v906_v17  ;;  %v907_v18 = vmov 0.0  }
   0xe   : > { %s254_s19 = scalar_lea.vmem %s1034_s1, %s946_s16  ;;  %s246_s22 = scalar_lea.vmem %s1033_s0, %s946_s16  ;;  %277 = vst.msk [vmem:[#allocation2 + $0x8] sm:$0xff] %vm275_vm1, %v905_v8  ;;  %855 = vset.pattern.permute.xlu1 %v906_v17 }
   0xf   : > { %v293_v0 = vld [vmem:[%s254_s19] sm:$0xff]  ;;  %v295_v1 = vld [vmem:[%s254_s19 + $0x10] sm:$0xff]  ;;  %v294_v4 = vld [vmem:[%s254_s19 + $0x8] sm:$0xff]  ;;  %278 = vst.msk [vmem:[#allocation2 + $0x10] sm:$0xff] %vm275_vm1, %v905_v8  ;;  %s262_s25 = scalar_lea.vmem %s1035_s2, %s946_s16  ;;  %s270_s28 = scalar_lea.vmem %s1036_s3, %s946_s16 }
  0x10   : > { %v289_v2 = vld [vmem:[%s246_s22] sm:$0xff]  ;;  %809 = vmatpush.xpose.msk.msra.mxu0 %vm284_vm0, %v293_v0  ;;  %813 = vmatpush.xpose.msk.msra.mxu2 %vm284_vm0, %v295_v1  ;;  %v291_v3 = vld [vmem:[%s246_s22 + $0x10] sm:$0xff]  ;;  %v296_v5 = vld [vmem:[%s254_s19 + $0x18] sm:$0xff]  ;;  %279 = vst.msk [vmem:[#allocation2 + $0x18] sm:$0xff] %vm275_vm1, %v905_v8 }
  0x11   : > { %811 = vmatpush.xpose.msk.msra.mxu1 %vm284_vm0, %v294_v4  ;;  %815 = vmatpush.xpose.msk.msra.mxu3 %vm284_vm0, %v296_v5  ;;  %v290_v6 = vld [vmem:[%s246_s22 + $0x8] sm:$0xff]  ;;  %v292_v7 = vld [vmem:[%s246_s22 + $0x18] sm:$0xff]  ;;  %282 = vst.msk [vmem:[#allocation3 + $0x10] sm:$0xff] %vm275_vm1, %v907_v18  ;;  %v299_v35 = vld [vmem:[%s262_s25 + $0x10] sm:$0xff] }
  0x12   : > { %280 = vst.msk [vmem:[#allocation3] sm:$0xff] %vm275_vm1, %v907_v18  ;;  %v300_v36 = vld [vmem:[%s262_s25 + $0x18] sm:$0xff]  ;;  %v297_v37 = vld [vmem:[%s262_s25] sm:$0xff]  ;;  %v298_v38 = vld [vmem:[%s262_s25 + $0x8] sm:$0xff] }
  0x13   : > { %810 = vmatmul.msk.f32.vlgmr.msra.gmra.mxu0 %vm284_vm0, %v289_v2  ;;  %814 = vmatmul.msk.f32.vlgmr.msra.gmra.mxu2 %vm284_vm0, %v291_v3  ;;  %281 = vst.msk [vmem:[#allocation3 + $0x8] sm:$0xff] %vm275_vm1, %v907_v18 }
  0x14   : > { %812 = vmatmul.msk.f32.vlgmr.msra.gmra.mxu1 %vm284_vm0, %v290_v6  ;;  %816 = vmatmul.msk.f32.vlgmr.msra.gmra.mxu3 %vm284_vm0, %v292_v7  ;;  %283 = vst.msk [vmem:[#allocation3 + $0x18] sm:$0xff] %vm275_vm1, %v907_v18  ;;  %v986_v19 = vld [vmem:[#allocation2] sm:$0xff] }
  0x15   : > { %285 = vst.msk [vmem:[#allocation4] sm:$0xff] %vm284_vm0, %v907_v18  ;;  %v407_v25 = vld [vmem:[#allocation2 + $0x8] sm:$0xff]  ;;  %591 = vmatpush.msrb.mxu2 %v299_v35  ;;  %614 = vmatpush.msrb.mxu3 %v300_v36 }
  0x16   : > { %286 = vst.msk [vmem:[#allocation4 + $0x8] sm:$0xff] %vm284_vm0, %v907_v18  ;;  %v408_v23 = vld [vmem:[#allocation2 + $0x10] sm:$0xff]  ;;  %545 = vmatpush.msrb.mxu0 %v297_v37  ;;  %568 = vmatpush.msrb.mxu1 %v298_v38 }
  0x17   : > { %287 = vst.msk [vmem:[#allocation4 + $0x10] sm:$0xff] %vm284_vm0, %v907_v18  ;;  %v409_v31 = vld [vmem:[#allocation2 + $0x18] sm:$0xff] }
  0x18   : > { %288 = vst.msk [vmem:[#allocation4 + $0x18] sm:$0xff] %vm284_vm0, %v907_v18  ;;  %v472_v2 = vld [vmem:[#allocation3 + $0x10] sm:$0xff] }
  0x19   : > { %v470_v8 = vld [vmem:[#allocation3] sm:$0xff] }
  0x1b   : > { %v473_v36 = vld [vmem:[#allocation3 + $0x18] sm:$0xff] }
  0x90   : > { %v968_v9 = vpop.f32.mrf.mxu0 }
  0x91   : > { %v410_v10 = vsel %vm284_vm0, %v968_v9, -inf  ;;  %v972_v11 = vpop.f32.mrf.mxu1 }
  0x92   : > { %411 = vmax.xlane.f32.xlu1 %v410_v10  ;;  %v413_v14 = vsel %vm284_vm0, %v972_v11, -inf }
  0x96   : > { %v377_v12 = vpop.f32.mrf.mxu2 }
  0x97   : > { %v416_v13 = vsel %vm284_vm0, %v377_v12, -inf  ;;  %v403_v15 = vpop.f32.mrf.mxu3 }
  0x98   : > { %417 = vmax.xlane.f32.xlu0 %v416_v13  ;;  %v419_v16 = vsel %vm284_vm0, %v403_v15, -inf  ;;  %v471_v13 = vld [vmem:[#allocation3 + $0x8] sm:$0xff] }
  0x9a   : > { %414 = vmax.xlane.f32.xlu1 %v413_v14  ;;  %v499_v14 = vld [vmem:[#allocation4] sm:$0xff] }
  0xa0   : > { %420 = vmax.xlane.f32.xlu0 %v419_v16 }
 0x105   : > { %v412_v20 = vpop.xlane.xlu1 %411 }
 0x106   : > { %v422_v21 = vmax.f32 %v986_v19, %v412_v20 }
 0x108   : > { %v426_v22 = vsub.f32 %v986_v19, %v422_v21  ;;  %627 = vst.msk [vmem:[#allocation2] sm:$0xff] %vm275_vm1, %v422_v21  ;;  %440 = vperm.xlu0 %854, %v422_v21  }
 0x10a   : > { %v430_v58 = vmul.f32 1.442695, %v426_v22 }
 0x10b   : > { %v418_v24 = vpop.xlane.xlu0 %417 }
 0x10c   : > { %v424_v26 = vmax.f32 %v408_v23, %v418_v24 }
 0x10d   : > { %v415_v27 = vpop.xlane.xlu1 %414 }
 0x10e   : > { %v428_v28 = vsub.f32 %v408_v23, %v424_v26  ;;  %629 = vst.msk [vmem:[#allocation2 + $0x10] sm:$0xff] %vm275_vm1, %v424_v26  ;;  %v423_v29 = vmax.f32 %v407_v25, %v415_v27  ;;  %450 = vperm.xlu2 %856, %v424_v26   ;;  %v501_v23 = vld [vmem:[#allocation4 + $0x10] sm:$0xff] }
 0x110   : > { %v427_v30 = vsub.f32 %v407_v25, %v423_v29  ;;  %628 = vst.msk [vmem:[#allocation2 + $0x8] sm:$0xff] %vm275_vm1, %v423_v29  ;;  %445 = vperm.xlu1 %855, %v423_v29   ;;  %v434_v59 = vmul.f32 1.442695, %v428_v28 }
 0x112   : > { %v432_v60 = vmul.f32 1.442695, %v427_v30 }
 0x113   : > { %v421_v32 = vpop.xlane.xlu0 %420 }
 0x114   : > { %v425_v33 = vmax.f32 %v409_v31, %v421_v32 }
 0x116   : > { %v429_v34 = vsub.f32 %v409_v31, %v425_v33  ;;  %630 = vst.msk [vmem:[#allocation2 + $0x18] sm:$0xff] %vm275_vm1, %v425_v33  ;;  %455 = vperm.xlu2 %856, %v425_v33   ;;  %v500_v31 = vld [vmem:[#allocation4 + $0x8] sm:$0xff] }
 0x118   : > { %v436_v1 = vmul.f32 1.442695, %v429_v34 }
 0x168   : > { %v451_v39 = vpop.permute.xlu2 %450 }
 0x169   : > { %v460_v40 = vsub.f32 %v377_v12, %v451_v39 }
 0x16b   : > { %v466_v41 = vmul.f32 1.442695, %v460_v40  ;;  %v502_v40 = vld [vmem:[#allocation4 + $0x18] sm:$0xff] }
 0x16d   : > { %857 = vpow2.f32 %v466_v41 }
 0x170   : > { %v456_v42 = vpop.permute.xlu2 %455 }
 0x171   : > { %v461_v43 = vsub.f32 %v403_v15, %v456_v42 }
 0x173   : > { %v858_v44 = vpop.eup %857  ;;  %v468_v45 = vmul.f32 1.442695, %v461_v43 }
 0x174   : > { %819 = vmatmul.msk.f32.vlgmr.msrb.gmra.mxu2 %vm284_vm0, %v858_v44  ;;  %v484_v46 = vsel %vm284_vm0, %v858_v44, 0.0 }
 0x175   : > { %859 = vpow2.f32 %v468_v45  ;;  %485 = vadd.xlane.f32.xlu0 %v484_v46 }
 0x17a   : > { %v441_v47 = vpop.permute.xlu0 %440 }
 0x17b   : > { %v860_v48 = vpop.eup %859  ;;  %v458_v49 = vsub.f32 %v968_v9, %v441_v47 }
 0x17c   : > { %820 = vmatmul.msk.f32.vlgmr.msrb.gmra.mxu3 %vm284_vm0, %v860_v48  ;;  %v487_v0 = vsel %vm284_vm0, %v860_v48, 0.0 }
 0x17d   : > { %v462_v50 = vmul.f32 1.442695, %v458_v49 }
 0x17f   : > { %861 = vpow2.f32 %v462_v50 }
 0x182   : > { %v446_v51 = vpop.permute.xlu1 %445 }
 0x183   : > { %v459_v52 = vsub.f32 %v972_v11, %v446_v51 }
 0x185   : > { %v862_v53 = vpop.eup %861  ;;  %v464_v54 = vmul.f32 1.442695, %v459_v52 }
 0x186   : > { %817 = vmatmul.msk.f32.vlgmr.msrb.gmra.mxu0 %vm284_vm0, %v862_v53  ;;  %v478_v55 = vsel %vm284_vm0, %v862_v53, 0.0 }
 0x187   : > { %863 = vpow2.f32 %v464_v54  ;;  %479 = vadd.xlane.f32.xlu2 %v478_v55 }
 0x188   : > { %865 = vpow2.f32 %v430_v58 }
 0x189   : > { %867 = vpow2.f32 %v434_v59 }
 0x18a   : > { %869 = vpow2.f32 %v432_v60 }
 0x18b   : > { %871 = vpow2.f32 %v436_v1 }
 0x18d   : > { %v864_v56 = vpop.eup %863 }
 0x18e   : > { %818 = vmatmul.msk.f32.vlgmr.msrb.gmra.mxu1 %vm284_vm0, %v864_v56  ;;  %v481_v57 = vsel %vm284_vm0, %v864_v56, 0.0  ;;  %v866_v61 = vpop.eup %865 }
 0x18f   : > { %482 = vadd.xlane.f32.xlu1 %v481_v57  ;;  %v868_v62 = vpop.eup %867  ;;  %v474_v10 = vmul.f32 %v866_v61, %v470_v8 }
 0x190   : > { %v870_v63 = vpop.eup %869  ;;  %v476_v4 = vmul.f32 %v868_v62, %v472_v2 }
 0x191   : > { %v872_v3 = vpop.eup %871  ;;  %v475_v15 = vmul.f32 %v870_v63, %v471_v13 }
 0x192   : > { %v477_v37 = vmul.f32 %v872_v3, %v473_v36 }
 0x19f   : > { %505 = vperm.xlu2 %856, %v866_v61  }
 0x1a7   : > { %515 = vperm.xlu2 %856, %v868_v62  }
 0x1a8   : > { %510 = vperm.xlu1 %855, %v870_v63  }
 0x1d0   : > { %488 = vadd.xlane.f32.xlu2 %v487_v0 }
 0x1e8   : > { %v486_v5 = vpop.xlane.xlu0 %485  ;;  %520 = vperm.xlu2 %856, %v872_v3  }
 0x1e9   : > { %v492_v6 = vadd.f32 %v486_v5, %v476_v4 }
 0x1eb   : > { %497 = vst.msk [vmem:[#allocation3 + $0x10] sm:$0xff] %vm275_vm1, %v492_v6 }
 0x1f2   : > { %v636_v7 = vld [vmem:[#allocation3 + $0x10] sm:$0xff] }
 0x1f3   : > { %873 = vrcp.f32 %v636_v7 }
 0x1f7   : > { %v593_v27 = vpop.f32.mrf.mxu2 }
 0x1f9   : > { %v874_v9 = vpop.eup %873 }
 0x1fa   : > { %v480_v11 = vpop.xlane.xlu2 %479  ;;  %658 = vperm.xlu1 %855, %v874_v9  }
 0x1fb   : > { %v490_v12 = vadd.f32 %v480_v11, %v474_v10 }
 0x1fd   : > { %495 = vst.msk [vmem:[#allocation3] sm:$0xff] %vm275_vm1, %v490_v12 }
 0x1ff   : > { %v616_v43 = vpop.f32.mrf.mxu3 }
 0x202   : > { %v506_v16 = vpop.permute.xlu2 %505  ;;  %v483_v17 = vpop.xlane.xlu1 %482 }
 0x203   : > { %v523_v18 = vmul.f32 %v506_v16, %v499_v14  ;;  %v491_v19 = vadd.f32 %v483_v17, %v475_v15  ;;  %v547_v20 = vpop.f32.mrf.mxu0 }
 0x204   : > { %v634_v21 = vld [vmem:[#allocation3] sm:$0xff] }
 0x205   : > { %496 = vst.msk [vmem:[#allocation3 + $0x8] sm:$0xff] %vm275_vm1, %v491_v19  ;;  %v619_v22 = vadd.f32 %v547_v20, %v523_v18  ;;  %875 = vrcp.f32 %v634_v21 }
 0x207   : > { %623 = vst.msk [vmem:[#allocation4] sm:$0xff] %vm284_vm0, %v619_v22 }
 0x20a   : > { %v516_v24 = vpop.permute.xlu2 %515 }
 0x20b   : > { %v876_v25 = vpop.eup %875  ;;  %v525_v26 = vmul.f32 %v516_v24, %v501_v23  ;;  %v570_v34 = vpop.f32.mrf.mxu1 }
 0x20c   : > { %648 = vperm.xlu0 %854, %v876_v25   ;;  %v635_v28 = vld [vmem:[#allocation3 + $0x8] sm:$0xff] }
 0x20d   : > { %v621_v29 = vadd.f32 %v593_v27, %v525_v26  ;;  %877 = vrcp.f32 %v635_v28 }
 0x20e   : > { %v642_v53 = vld [vmem:[#allocation4] sm:$0xff] }
 0x20f   : > { %625 = vst.msk [vmem:[#allocation4 + $0x10] sm:$0xff] %vm284_vm0, %v621_v29 }
 0x213   : > { %v878_v30 = vpop.eup %877 }
 0x214   : > { %653 = vperm.xlu2 %856, %v878_v30  }
 0x216   : > { %v644_v47 = vld [vmem:[#allocation4 + $0x10] sm:$0xff] }
 0x21a   : > { %v511_v32 = vpop.permute.xlu1 %510 }
 0x21b   : > { %v524_v33 = vmul.f32 %v511_v32, %v500_v31 }
 0x21d   : > { %v620_v35 = vadd.f32 %v570_v34, %v524_v33 }
 0x21f   : > { %624 = vst.msk [vmem:[#allocation4 + $0x8] sm:$0xff] %vm284_vm0, %v620_v35 }
 0x226   : > { %v643_v50 = vld [vmem:[#allocation4 + $0x8] sm:$0xff] }
 0x243   : > { %v489_v38 = vpop.xlane.xlu2 %488 }
 0x244   : > { %v493_v39 = vadd.f32 %v489_v38, %v477_v37 }
 0x246   : > { %498 = vst.msk [vmem:[#allocation3 + $0x18] sm:$0xff] %vm275_vm1, %v493_v39 }
 0x24b   : > { %v521_v41 = vpop.permute.xlu2 %520 }
 0x24c   : > { %v526_v42 = vmul.f32 %v521_v41, %v502_v40 }
 0x24d   : > { %v637_v44 = vld [vmem:[#allocation3 + $0x18] sm:$0xff] }
 0x24e   : > { %v622_v45 = vadd.f32 %v616_v43, %v526_v42  ;;  %879 = vrcp.f32 %v637_v44 }
 0x250   : > { %626 = vst.msk [vmem:[#allocation4 + $0x18] sm:$0xff] %vm284_vm0, %v622_v45 }
 0x254   : > { %v880_v46 = vpop.eup %879 }
 0x255   : > { %663 = vperm.xlu2 %856, %v880_v46  }
 0x257   : > { %v645_v56 = vld [vmem:[#allocation4 + $0x18] sm:$0xff] }
 0x26c   : > { %v659_v48 = vpop.permute.xlu1 %658 }
 0x26d   : > { %v668_v49 = vmul.f32 %v659_v48, %v644_v47 }
 0x26e   : > { %v654_v51 = vpop.permute.xlu2 %653 }
 0x26f   : > { %672 = vst.msk [vmem:[%s270_s28 + $0x10] sm:$0xff] %vm284_vm0, %v668_v49  ;;  %v667_v52 = vmul.f32 %v654_v51, %v643_v50 }
 0x271   : > { %671 = vst.msk [vmem:[%s270_s28 + $0x8] sm:$0xff] %vm284_vm0, %v667_v52 }
 0x27e   : > { %v649_v54 = vpop.permute.xlu0 %648 }
 0x27f   : > { %v666_v55 = vmul.f32 %v649_v54, %v642_v53 }
 0x281   : > { %670 = vst.msk [vmem:[%s270_s28] sm:$0xff] %vm284_vm0, %v666_v55 }
 0x2af   : > { %v664_v57 = vpop.permute.xlu2 %663 }
 0x2b0   : > { %v669_v58 = vmul.f32 %v664_v57, %v645_v56 }
 0x2b2   : > { %673 = vst.msk [vmem:[%s270_s28 + $0x18] sm:$0xff] %vm284_vm0, %v669_v58 }
 0x2b3 PF: > { %s13_s14 = sadd.s32 1, %s903_s14   ;;  %s1037_s12 = smov %s899_s13 }
 0x2b4   : > { %p10_p5 = scmp.ge.s32.totalorder %s13_s14, 4   ;;  %s1038_s13 = smov %s1040_s15 }
 0x2b6   :  { %12 = sbr.rel (!%p10_p5) target bundleno = 2 (0x2), region = 76 }

</bundles_post_ra>
